<compile_context>
chip_gen: v7x
topology: tpu7x:2x2x1
jax: 0.10.0
libtpu: 0.0.40
codegen_flags: <defaults>
</compile_context>

<pallas_src>
import jax
import jax.numpy as jnp
import numpy as np
from jax.experimental import pallas as pl
from jax.experimental.pallas import tpu as pltpu


_MIN_LANE_WIDTH = 128          # below this, the level is built on the host
_ROW_BYTES_BUDGET = 8 * 1024 * 1024   # budget for the double-buffered output block
_MAX_TILE_ROWS = 512           # caps the static unroll at 64 groups of 8 rows


def _round_up(x, m):
    return ((x + m - 1) // m) * m


def _pick_tile_h(grid_h, lane_width, want_blocks=2):
    """Row-tile height: multiple of 8, byte-budgeted, >= want_blocks blocks.

    want_blocks=2 keeps at least two blocks on the 'parallel' grid axis so the
    two TensorCores on v7x both get work; on v5e/v6e the extra ~0.35us step is
    noise (and everything is cached per geometry anyway).
    """
    bytes_per_row = lane_width * 4
    max_rows = (_ROW_BYTES_BUDGET // (2 * bytes_per_row)) // 8 * 8
    max_rows = max(8, min(max_rows, _MAX_TILE_ROWS))
    th = _round_up(pl.cdiv(grid_h, want_blocks), 8) if grid_h > 8 else 8
    return max(8, min(th, max_rows))


def _anchor_row_kernel(c8_ref, s8_ref, out_ref):
    """out[8k + s, l] = c8[s, l] + (row0 + 8k) * s8[s, l].

    Lane index l = gx*(A*4) + a*4 + c.  c8 already carries gx*stride_w (x
    coords) + base_anchor[a, c] + s*stride_h (y coords, s = sublane 0..7);
    s8 carries stride_h on the y-coordinate lanes and 0 elsewhere.  Only the
    per-8-row-group y offset (row0 + 8k) is computed here: one scalar*vreg
    multiply + one add + one store per output vreg, no cross-lane work.
    """
    th = out_ref.shape[0]                                  # multiple of 8
    row0 = (pl.program_id(0) * th).astype(jnp.float32)     # global first row of block
    c8 = c8_ref[...]                                       # (8, L)
    s8 = s8_ref[...]                                       # (8, L)
    for k in range(th // 8):                               # static unroll (<= 64)
        off = row0 + jnp.float32(8 * k)
        out_ref[pl.ds(8 * k, 8), :] = c8 + off * s8


def _level_constants(base_anchors, grid_w, stride_h, stride_w):
    """Host-side precompute of the two (8, L) constants for one level."""
    base = np.asarray(base_anchors, np.float32)            # (A, 4)
    A = base.shape[0]
    L = grid_w * A * 4
    xs = np.arange(grid_w, dtype=np.float32) * np.float32(stride_w)            # (W,)
    x_shift = np.stack([xs, np.zeros_like(xs), xs, np.zeros_like(xs)], axis=1)  # (W, 4)
    row_const = (x_shift[:, None, :] + base[None, :, :]).reshape(L)             # (L,)
    y_step = (np.tile(np.array([0.0, 1.0, 0.0, 1.0], np.float32), grid_w * A)
              * np.float32(stride_h))                                           # (L,)
    sub = np.arange(8, dtype=np.float32)[:, None]                               # (8, 1)
    c8 = (row_const[None, :] + sub * y_step[None, :]).astype(np.float32)        # (8, L)
    s8 = np.broadcast_to(y_step[None, :], (8, L)).astype(np.float32).copy()     # (8, L)
    return c8, s8, L


def grid_anchors_level_pallas(base_anchors, grid_h, grid_w, stride_h, stride_w):
    """One lane-dense level -> (grid_h, grid_w*A*4) float32 on device.

    Row-major element order is (gy, gx, a, c), identical to torch's
    (shifts.view(-1,1,4) + base.view(1,-1,4)).reshape(-1,4), so the final
    reshape to (H*W*A, 4) needs no data reordering.
    """
    c8, s8, L = _level_constants(base_anchors, grid_w, stride_h, stride_w)
    th = _pick_tile_h(grid_h, L)
    n_blocks = pl.cdiv(grid_h, th)
    return pl.pallas_call(
        _anchor_row_kernel,
        out_shape=jax.ShapeDtypeStruct((grid_h, L), jnp.float32),
        grid=(n_blocks,),
        in_specs=[
            # Constant index_map -> fetched once, stays resident across steps.
            # TODO(synk): pipeline_mode=pl.Buffered(1) would shave one tiny
            # extra buffer; skipped since the whole footprint is < ~9 MiB.
            pl.BlockSpec((8, L), lambda i: (0, 0)),
            pl.BlockSpec((8, L), lambda i: (0, 0)),
        ],
        out_specs=pl.BlockSpec((th, L), lambda i: (i, 0)),
        compiler_params=pltpu.CompilerParams(
            dimension_semantics=("parallel",),
            vmem_limit_bytes=32 * 1024 * 1024,
        ),
    )(jnp.asarray(c8), jnp.asarray(s8))


def _level_anchors_host(base_anchors, grid_h, grid_w, stride_h, stride_w):
    """Host (numpy) anchors for tiny tail levels -> (H*W*A, 4) float32."""
    base = np.asarray(base_anchors, np.float32)
    sx = np.arange(grid_w, dtype=np.float32) * np.float32(stride_w)
    sy = np.arange(grid_h, dtype=np.float32) * np.float32(stride_h)
    yy, xx = np.meshgrid(sy, sx, indexing="ij")
    shifts = np.stack([xx.ravel(), yy.ravel(), xx.ravel(), yy.ravel()], axis=1)
    return (shifts[:, None, :] + base[None, :, :]).reshape(-1, 4).astype(np.float32)


class AnchorsGeneratorPallas:
    """JAX/Pallas port of the PyTorch AnchorsGenerator forward pass."""

    def __init__(self, sizes=(128, 256, 512), aspect_ratios=(0.5, 1.0, 2.0)):
        if not isinstance(sizes[0], (list, tuple)):
            sizes = tuple((s,) for s in sizes)
        if not isinstance(aspect_ratios[0], (list, tuple)):
            aspect_ratios = (aspect_ratios,) * len(sizes)
        assert len(sizes) == len(aspect_ratios)
        self.sizes = sizes
        self.aspect_ratios = aspect_ratios
        self.cell_anchors = None
        # Kept across calls (torch clears it each forward); anchors are a pure
        # function of static shapes, so keeping it is output-identical and the
        # biggest end-to-end win.
        self._cache = {}

    @staticmethod
    def generate_anchors(scales, aspect_ratios, dtype=np.float32):
        scales = np.asarray(scales, dtype=dtype)
        ars = np.asarray(aspect_ratios, dtype=dtype)
        h_ratios = np.sqrt(ars)
        w_ratios = 1.0 / h_ratios
        ws = (w_ratios[:, None] * scales[None, :]).reshape(-1)
        hs = (h_ratios[:, None] * scales[None, :]).reshape(-1)
        base = np.stack([-ws, -hs, ws, hs], axis=1) / 2.0
        return np.round(base)  # round-half-to-even, same as torch.round

    def set_cell_anchors(self):
        if self.cell_anchors is None:
            self.cell_anchors = [
                self.generate_anchors(s, a)
                for s, a in zip(self.sizes, self.aspect_ratios)
            ]

    def num_anchors_per_location(self):
        return [len(s) * len(a) for s, a in zip(self.sizes, self.aspect_ratios)]

    def grid_anchors(self, grid_sizes, strides):
        """Per-level pieces: Pallas for lane-dense levels, numpy for tails."""
        pieces = []
        for (gh, gw), (sh, sw), base in zip(grid_sizes, strides, self.cell_anchors):
            lane_width = gw * base.shape[0] * 4
            if lane_width >= _MIN_LANE_WIDTH and gh >= 8:
                pieces.append(grid_anchors_level_pallas(base, gh, gw, sh, sw))
            else:
                pieces.append(_level_anchors_host(base, gh, gw, sh, sw))
        return pieces

    def cached_grid_anchors(self, grid_sizes, strides):
        key = str(grid_sizes) + str(strides)
        if key not in self._cache:
            pieces = self.grid_anchors(grid_sizes, strides)

            # One jitted combine per geometry: XLA fuses the (H, W*A*4) ->
            # (H*W*A, 4) relayouts into the concat writeback; runs once, cached.
            @jax.jit
            def _assemble(*xs):
                return jnp.concatenate([x.reshape(-1, 4) for x in xs], axis=0)

            self._cache[key] = _assemble(*pieces)
        return self._cache[key]

    def __call__(self, images, image_sizes, feature_maps):
        # images: (B, C, H, W) NCHW; feature_maps: list of (B, C_i, H_i, W_i)
        grid_sizes = tuple(tuple(int(d) for d in fm.shape[-2:]) for fm in feature_maps)
        image_size = tuple(int(d) for d in images.shape[-2:])
        strides = tuple(
            (image_size[0] // g[0], image_size[1] // g[1]) for g in grid_sizes
        )
        self.set_cell_anchors()
        anchors_per_image = self.cached_grid_anchors(grid_sizes, strides)
        # anchors do not depend on image content: same tensor per image
        return [anchors_per_image for _ in image_sizes]


def _reference_numpy(gen, images, feature_maps):
    """Pure numpy reference mirroring the PyTorch code path."""
    grid_sizes = [fm.shape[-2:] for fm in feature_maps]
    image_size = images.shape[-2:]
    strides = [(image_size[0] // g[0], image_size[1] // g[1]) for g in grid_sizes]
    per_level = []
    for (gh, gw), (sh, sw), scales, ars in zip(
        grid_sizes, strides, gen.sizes, gen.aspect_ratios
    ):
        scales = np.asarray(scales, np.float32)
        ars = np.asarray(ars, np.float32)
        h_r = np.sqrt(ars)
        w_r = 1.0 / h_r
        ws = (w_r[:, None] * scales[None, :]).reshape(-1)
        hs = (h_r[:, None] * scales[None, :]).reshape(-1)
        base = np.round(np.stack([-ws, -hs, ws, hs], axis=1) / 2.0)
        sx = np.arange(gw, dtype=np.float32) * sw
        sy = np.arange(gh, dtype=np.float32) * sh
        yy, xx = np.meshgrid(sy, sx, indexing="ij")
        shifts = np.stack(
            [xx.reshape(-1), yy.reshape(-1), xx.reshape(-1), yy.reshape(-1)], axis=1
        )
        per_level.append((shifts[:, None, :] + base[None, :, :]).reshape(-1, 4))
    return np.concatenate(per_level, axis=0)


if __name__ == "__main__":
    key = jax.random.PRNGKey(0)
    k_img, k0, k1, k2 = jax.random.split(key, 4)

    # NCHW; image 80x64, three FPN-style levels (20x16, 10x8, 5x4).
    # Level 0 (lane width 16*3*4 = 192) exercises the Pallas kernel with a
    # partial last row-block (grid_h=20, tile=16 -> blocks of 16 and 4 rows);
    # levels 1-2 are sub-128-lane tails handled on the host.
    images = jax.random.normal(k_img, (2, 3, 80, 64), jnp.float32)
    feature_maps = [
        jax.random.normal(k0, (2, 4, 20, 16), jnp.float32),
        jax.random.normal(k1, (2, 4, 10, 8), jnp.float32),
        jax.random.normal(k2, (2, 4, 5, 4), jnp.float32),
    ]
    image_sizes = [(80, 64), (80, 64)]  # analogue of ImageList.image_sizes

    gen = AnchorsGeneratorPallas(sizes=(128, 256, 512),
                                 aspect_ratios=(0.5, 1.0, 2.0))
    anchors = gen(images, image_sizes, feature_maps)
    anchors = [jax.block_until_ready(a) for a in anchors]

    # second call exercises the geometry cache (no recompute)
    anchors2 = gen(images, image_sizes, feature_maps)
    anchors2 = [jax.block_until_ready(a) for a in anchors2]

    ref = _reference_numpy(gen, np.asarray(images),
                           [np.asarray(f) for f in feature_maps])
    assert len(anchors) == len(image_sizes)
    for a, a2 in zip(anchors, anchors2):
        assert a.shape == ref.shape and a.dtype == jnp.float32
        np.testing.assert_allclose(np.asarray(a), ref, rtol=0, atol=1e-5)
        np.testing.assert_allclose(np.asarray(a2), ref, rtol=0, atol=1e-5)

    print("KERNEL_OK")
</pallas_src>

<mosaic_0001>
module attributes {stable_mosaic.version = 11 : i64} {
  func.func @_anchor_row_kernel(%arg0: i32, %arg1: memref<8x192xf32, #tpu.memory_space<vmem>>, %arg2: memref<8x192xf32, #tpu.memory_space<vmem>>, %arg3: memref<16x192xf32, #tpu.memory_space<vmem>>) attributes {dimension_semantics = [#tpu.dimension_semantics<parallel>], iteration_bounds = array<i64: 2>, scalar_prefetch = 0 : i64, scratch_operands = 0 : i64, tpu.core_type = #tpu.core_type<tc>, window_params = [{pipeline_mode = #tpu.pipeline_mode<synchronous>, transform_indices = @transform_0, window_bounds = array<i64: 8, 192>}, {pipeline_mode = #tpu.pipeline_mode<synchronous>, transform_indices = @transform_1, window_bounds = array<i64: 8, 192>}, {transform_indices = @transform_2, window_bounds = array<i64: 16, 192>}]} {
    %c16_i32 = arith.constant 16 : i32
    %0 = arith.muli %arg0, %c16_i32 : i32
    %1 = arith.sitofp %0 : i32 to f32
    %c0 = arith.constant 0 : index
    %c0_0 = arith.constant 0 : index
    %2 = vector.load %arg1[%c0, %c0_0] : memref<8x192xf32, #tpu.memory_space<vmem>>, vector<8x192xf32>
    %c0_1 = arith.constant 0 : index
    %c0_2 = arith.constant 0 : index
    %3 = vector.load %arg2[%c0_1, %c0_2] : memref<8x192xf32, #tpu.memory_space<vmem>>, vector<8x192xf32>
    %cst = arith.constant 0.000000e+00 : f32
    %4 = arith.addf %1, %cst : f32
    %5 = vector.broadcast %4 : f32 to vector<8x192xf32>
    %6 = arith.mulf %5, %3 : vector<8x192xf32>
    %7 = arith.addf %2, %6 : vector<8x192xf32>
    %c0_3 = arith.constant 0 : index
    %c0_4 = arith.constant 0 : index
    %8 = vector.load %arg3[%c0_3, %c0_4] : memref<16x192xf32, #tpu.memory_space<vmem>>, vector<8x192xf32>
    tpu.vector_store %arg3[%c0_3, %c0_4], %7 {strides = array<i32>} : memref<16x192xf32, #tpu.memory_space<vmem>>, vector<8x192xf32>,
    %cst_5 = arith.constant 8.000000e+00 : f32
    %9 = arith.addf %1, %cst_5 : f32
    %10 = vector.broadcast %9 : f32 to vector<8x192xf32>
    %11 = arith.mulf %10, %3 : vector<8x192xf32>
    %12 = arith.addf %2, %11 : vector<8x192xf32>
    %c8 = arith.constant 8 : index
    %c0_6 = arith.constant 0 : index
    %13 = vector.load %arg3[%c8, %c0_6] : memref<16x192xf32, #tpu.memory_space<vmem>>, vector<8x192xf32>
    tpu.vector_store %arg3[%c8, %c0_6], %12 {strides = array<i32>} : memref<16x192xf32, #tpu.memory_space<vmem>>, vector<8x192xf32>,
    return
  }
  func.func @transform_0(%arg0: i32) -> (i32, i32) {
    %c0_i32 = arith.constant 0 : i32
    %c0_i32_0 = arith.constant 0 : i32
    %c0_i32_1 = arith.constant 0 : i32
    return %c0_i32, %c0_i32_0 : i32, i32
  }
  func.func @transform_1(%arg0: i32) -> (i32, i32) {
    %c0_i32 = arith.constant 0 : i32
    %c0_i32_0 = arith.constant 0 : i32
    %c0_i32_1 = arith.constant 0 : i32
    return %c0_i32, %c0_i32_0 : i32, i32
  }
  func.func @transform_2(%arg0: i32) -> (i32, i32) {
    %c0_i32 = arith.constant 0 : i32
    %c0_i32_0 = arith.constant 0 : i32
    return %arg0, %c0_i32 : i32, i32
  }
}

</mosaic_0001>

<bundles_post_ra>
// kernel: tpu_custom_call.1
= control target key start
LH: loop header
LB: loop body
LE: loop exit
PB: predicated region body
PF: predicated region fallthrough
CT: control target
= control target key end

     0   :  { %7 = vsyncpa [#allocation3], 0  ;;  %s685_s0 = inlined_call_operand.hbm [shape: f32[8,192], index: 0, kind: input, shape index: {}]   ;;  %s686_s1 = inlined_call_operand.hbm [shape: f32[8,192], index: 1, kind: input, shape index: {}]   ;;  %s687_s2 = inlined_call_operand.hbm [shape: f32[20,192], index: 2, kind: output, shape index: {}]  }
   0x1   :  { %8 = vsyncpa [#allocation6], 0 }
   0x2   :  { %9 = vsyncpa [#allocation4], 0 }
   0x3   :  { %11 = vsyncpa [#allocation4 + $0x1], 0  ;;  %s503_s9 = smov 0   ;;  %s505_s10 = smov 0  }
   0x4   :  { %s507_s11 = smov 0   ;;  %s509_s12 = smov 0  }
   0x5 LB: > { %s524_s13 = sadd.s32 4294967295, %s481_s12   ;;  %s271_s14 = sadd.s32 4294967294, %s481_s12   ;;  %s481_s12 = sphi %s509_s12, %s704_s12   ;;  %s477_s11 = sphi %s507_s11, %s703_s11   ;;  %s473_s10 = sphi %s505_s10, %s702_s10   ;;  %s469_s9 = sphi %s503_s9, %s701_s9  }
   0x6   : > { %s528_s15 = sadd.s32 1, %s481_s12   ;;  %s66_s16 = sadd.s32 1, %s477_s11 }
   0x7   : > { %s63_s17 = ssub.s32 %s481_s12, %s528_s15  ;;  %p76_p0 = scmp.ne.s32.totalorder %s477_s11, %s473_s10 }
   0x8   : > { %p64_p1 = scmp.eq.s32.totalorder %s63_s17, 0  ;;  %p77_p2 = scmp.eq.s32.totalorder %s524_s13, 1 }
   0x9   : > { %p82_p3 = scmp.ne.s32.totalorder %s473_s10, %s469_s9  ;;  %p83_p4 = scmp.eq.s32.totalorder %s271_s14, 1 }
   0xa   : > { %s539_s18 = scalar_select %p64_p1, %s477_s11, %s66_s16  }
   0xb   : > { %p541_p5 = por %p77_p2, %p76_p0  ;;  %p545_p6 = por %p83_p4, %p82_p3 }
   0xc   : > { %p272_p7 = scmp.ge.s32.totalorder %s481_s12, 1  ;;  %p90_p8 = scmp.lt.s32.totalorder %s481_s12, 3 }
   0xd   : > { %s690_s19 = scalar_select %p541_p5, 1, 0 }
   0xe   : > { %s691_s20 = scalar_select %p545_p6, 1, 0 }
   0xf   : > { %p688_p9 = scmp.eq.s32.totalorder %s524_s13, 0  ;;  %p552_p10 = pnand %p272_p7, %p90_p8 }
  0x10   : > { %s483_s22 = smov [#allocation2]   ;;  %s484_s24 = smov [#allocation5]  }
  0x11   : > { %s692_s21 = scalar_select %p552_p10, 1, 0 }
  0x12   : > { %s103_s23 = sshll.u32 %s483_s22, 4  ;;  %p303_p11 = pneg %p552_p10  ;;  %s104_s23 = int_to_ptr.vmem [resolvable:$true] %s103_s23 }
  0x13   : > { %s114_s25 = sshll.u32 %s484_s24, 4  ;;  %s355_s29 = scalar_lea.hbm %s685_s0, 256  ;;  %s564_s25 = int_to_ptr.vmem [resolvable:$true] %s114_s25 }
  0x14   : > { %p560_p12 = pnand %p688_p9, %p303_p11  ;;  %p356_p13 = scmp.ne.s32.totalorder %s685_s0, %s355_s29 }
  0x15   : > { %p362_p3 = scmp.lt.u32.totalorder %s355_s29, %s685_s0 }
  0x16   : > { %p357_p0 = pneg %p560_p12 }
  0x18   : > { %p358_p1 = pnand %p357_p0, %p356_p13 }
  0x1a   : > { %p359_p2 = pneg %p358_p1 }
  0x1c   : > { %p364_p4 = pnand %p362_p3, %p359_p2 }
  0x1e   : > { %367 = shalt.err (!%p364_p4)
}
  0x1f   : > { %s368_s6 = scalar_lea.vmem %s104_s23, 256  ;;  %p376_p9 = scmp.lt.s32.totalorder %s104_s23, %s104_s23 }
  0x20   : > { %p369_p7 = scmp.ne.s32.totalorder %s104_s23, %s368_s6  ;;  %p377_p6 = scmp.lt.s32.totalorder %s368_s6, %s368_s6 }
  0x22   : > { %p371_p8 = pnand %p369_p7, %p357_p0  ;;  %p378_p5 = por %p377_p6, %p376_p9 }
  0x24   : > { %p372_p11 = pneg %p371_p8 }
  0x26   : > { %p379_p10 = pnand %p378_p5, %p372_p11 }
  0x28   : > { %382 = shalt.err (!%p379_p10)
}
  0x29   : > { %306 = dma.hbm_to_vmem [thread:$0]  (!%p560_p12), %s685_s0, 256, %s104_s23, [#allocation3]  }
  0x2a   : > { %s383_s17 = scalar_lea.hbm %s686_s1, 256 }
  0x2b   : > { %p384_p13 = scmp.ne.s32.totalorder %s686_s1, %s383_s17  ;;  %p390_p9 = scmp.lt.u32.totalorder %s383_s17, %s686_s1 }
  0x2d   : > { %p386_p6 = pnand %p384_p13, %p357_p0 }
  0x2f   : > { %p387_p5 = pneg %p386_p6 }
  0x31   : > { %p392_p10 = pnand %p390_p9, %p387_p5 }
  0x33   : > { %395 = shalt.err (!%p392_p10)
}
  0x34   : > { %s396_s23 = scalar_lea.vmem %s564_s25, 256  ;;  %p404_p4 = scmp.lt.s32.totalorder %s564_s25, %s564_s25 }
  0x35   : > { %p397_p1 = scmp.ne.s32.totalorder %s564_s25, %s396_s23  ;;  %p405_p7 = scmp.lt.s32.totalorder %s396_s23, %s396_s23 }
  0x37   : > { %p399_p2 = pnand %p397_p1, %p357_p0  ;;  %p406_p8 = por %p405_p7, %p404_p4 }
  0x39   : > { %p400_p3 = pneg %p399_p2 }
  0x3b   : > { %p407_p11 = pnand %p406_p8, %p400_p3 }
  0x3d   : > { %410 = shalt.err (!%p407_p11)
}
  0x3e   : > { %309 = dma.hbm_to_vmem [thread:$0]  (!%p560_p12), %s686_s1, 256, %s564_s25, [#allocation6]  }
  0x3f   : > { %p694_p13 = scmp.ne.s32.totalorder %s692_s21, 0 }
  0x40   : > { %p695_p6 = scmp.eq.s32.totalorder (!%p694_p13), %s524_s13, 0 }
  0x41   : > { %127 = sbr.rel (%p694_p13) target bundleno = 117 (0x75), region = 28 }
  0x48   : > { %456 = dma.done.wait (%p695_p6), [#allocation3], 256   ;;  %p696_p0 = pmov %p695_p6 }
  0x4a   : > { %458 = vsyncadd (%p696_p0), [#allocation3], 4294967040  ;;  %p697_p5 = pmov %p696_p0 }
  0x4b   : > { %p698_p9 = pmov %p696_p0 }
  0x4c   : > { %460 = dma.done.wait (%p697_p5), [#allocation6], 256  }
  0x4d   : > { %462 = vsyncadd (%p698_p9), [#allocation6], 4294967040  ;;  %s279_s26 = sshll.u32 %s524_s13, 4  ;;  %s145_s3 = sand.u32 1, %s473_s10   ;;  %v156_v2 = vld [vmem:[#allocation2] sm:$0xff]  ;;  %v158_v3 = vld [vmem:[#allocation5] sm:$0xff] }
  0x4e   : > { %s155_s25 = scvt.s32.f32 %s279_s26  ;;  %s278_s21 = sshll.u32 %s145_s3, 5  ;;  %v159_v4 = vld [vmem:[#allocation5 + $0x8] sm:$0xff]  ;;  %v157_v7 = vld [vmem:[#allocation2 + $0x8] sm:$0xff]  ;;  %vm167_vm0 = vcmask 523264  }
  0x4f   : > { %s147_s5 = scalar_lea.vmem [#allocation7], %s278_s21  ;;  %s625_s6 = scalar_lea.sflag [#allocation4], %s145_s3 }
  0x50   : > { %s169_s4 = sadd.f32 8.0, %s155_s25  ;;  %v161_v0 = vstv %s155_s25  ;;  %p699_p12 = scmp.ne.s32.totalorder %s690_s19, 0 }
  0x51   : > { %v162_v5 = vmul.f32 %v161_v0, %v158_v3  ;;  %v163_v6 = vmul.f32 %v161_v0, %v159_v4  ;;  %s281_s7 = sshll.u32 (%p699_p12), %s524_s13, 1 }
  0x52   : > { %v170_v1 = vstv %s169_s4  ;;  %184 = sbr.rel (!%p699_p12) target bundleno = 117 (0x75), region = 40  ;;  %s186_s8 = ssub.s32 (%p699_p12), 3, %s281_s7 }
  0x53   : > { %v171_v8 = vmul.f32 %v170_v1, %v158_v3  ;;  %v172_v9 = vmul.f32 %v170_v1, %v159_v4  ;;  %v164_v10 = vadd.f32 %v162_v5, %v156_v2  ;;  %v165_v11 = vadd.f32 %v163_v6, %v157_v7  ;;  %p187_p10 = scmp.lt.s32.totalorder (%p699_p12), %s186_s8, 2 }
  0x55   : > { %v173_v12 = vadd.f32 %v171_v8, %v156_v2  ;;  %v174_v13 = vadd.f32 %v172_v9, %v157_v7  ;;  %166 = vst [vmem:[%s147_s5] sm:$0xff] %v164_v10  ;;  %168 = vst.msk [vmem:[%s147_s5 + $0x8] sm:$0xff] %vm167_vm0, %v165_v11 }
  0x57   : > { %175 = vst [vmem:[%s147_s5 + $0x10] sm:$0xff] %v173_v12  ;;  %176 = vst.msk [vmem:[%s147_s5 + $0x18] sm:$0xff] %vm167_vm0, %v174_v13 }
  0x59   : > { %s706_s8 = smov (!%p187_p10, %s186_s8), 2 }
  0x5a   : > { %s630_s14 = sshll.u32 %s706_s8, 8 }
  0x5b   : > { %s192_s16 = ssub.s32 512, %s630_s14 }
  0x5c   : > { %193 = vsyncadd %s625_s6, %s192_s16  ;;  %p284_p1 = scmp.ne.s32.totalorder %s630_s14, 0  ;;  %s293_s17 = sshll.u32 %s524_s13, 9 }
  0x5d   : > { %s639_s24 = scalar_lea.hbm %s687_s2, %s293_s17  ;;  %s199_s27 = sshll.u32 %s147_s5, 4  ;;  %s641_s27 = int_to_ptr.vmem [resolvable:$true] %s199_s27 }
  0x5e   : > { %s411_s28 = scalar_lea.vmem %s641_s27, %s630_s14  ;;  %s485_s23 = smov [#allocation7]  }
  0x5f   : > { %p412_p2 = scmp.ne.s32.totalorder %s641_s27, %s411_s28  ;;  %s415_s29 = sshll.u32 %s485_s23, 4  ;;  %s416_s29 = int_to_ptr.vmem [resolvable:$false] %s415_s29 }
  0x60   : > { %s417_s13 = scalar_lea.vmem %s416_s29, 1024  ;;  %p418_p7 = scmp.lt.s32.totalorder %s641_s27, %s416_s29 }
  0x61   : > { %p413_p3 = pnand %p412_p2, %p284_p1  ;;  %p419_p8 = scmp.lt.s32.totalorder %s417_s13, %s411_s28 }
  0x63   : > { %p414_p4 = pneg %p413_p3  ;;  %p420_p11 = por %p419_p8, %p418_p7 }
  0x65   : > { %p421_p13 = pnand %p420_p11, %p414_p4 }
  0x67   : > { %424 = shalt.err (!%p421_p13)
}
  0x68   : > { %s425_s30 = scalar_lea.hbm %s639_s24, %s630_s14  ;;  %s429_s25 = scalar_lea.hbm %s687_s2, 768 }
  0x69   : > { %p426_p6 = scmp.ne.s32.totalorder %s639_s24, %s425_s30  ;;  %p430_p9 = scmp.lt.u32.totalorder %s639_s24, %s687_s2 }
  0x6a   : > { %p431_p12 = scmp.lt.u32.totalorder %s429_s25, %s425_s30  ;;  %p433_p2 = scmp.lt.u32.totalorder %s425_s30, %s639_s24 }
  0x6b   : > { %p427_p0 = pnand %p426_p6, %p284_p1 }
  0x6c   : > { %p432_p10 = por %p431_p12, %p430_p9 }
  0x6d   : > { %p428_p5 = pneg %p427_p0 }
  0x6e   : > { %p434_p3 = por %p433_p2, %p432_p10 }
  0x70   : > { %p435_p4 = pnand %p434_p3, %p428_p5 }
  0x72   : > { %438 = shalt.err (!%p435_p4)
}
  0x73   : > { %s486_s5 = smov 256   ;;  %s487_s7 = smov 16  }
  0x74   : > { %205 = dma.vmem_to_hbm [thread:$0]  (%p284_p1), %s641_s27, %s630_s14, %s639_s24, %s625_s6, %s486_s5, %s486_s5, %s487_s7  }
  0x75 PF: > { %p318_p7 = scmp.ge.s32.totalorder %s481_s12, 2  ;;  %s214_s8 = sand.u32 1, %s469_s9  }
  0x76   : > { %p700_p8 = scmp.ne.s32.totalorder %s691_s20, 0  ;;  %s215_s16 = scalar_lea.sflag [#allocation4], %s214_s8 }
  0x78   : > { %p311_p11 = pnand %p318_p7, %p700_p8 }
  0x7a   : > { %464 = dma.done.wait (!%p311_p11), %s215_s16, 512  }
  0x7b   : > { %466 = vsyncadd (!%p311_p11), %s215_s16, 4294966784  ;;  %p14_p13 = scmp.ge.s32.totalorder %s528_s15, 4   ;;  %s701_s9 = smov %s473_s10 }
  0x7c   : > { %s702_s10 = smov %s477_s11  ;;  %s703_s11 = smov %s539_s18 }
  0x7d   : > { %s704_s12 = smov %s528_s15  ;;  %16 = sbr.rel (!%p14_p13) target bundleno = 5 (0x5), region = 69 }
  0x84   :  { %220 = vsyncpa [#allocation3], 1 }
  0x85   :  { %222 = vsyncpa [#allocation3 + $0x1], 1 }
  0x86   :  { %223 = vsyncpa [#allocation6], 1 }
  0x87   :  { %224 = vsyncpa [#allocation4], 1 }
  0x88   :  { %226 = vsyncpa [#allocation4 + $0x1], 1 }

</bundles_post_ra>
